<compile_context>
chip_gen: v5e
topology: v5e:2x2
jax: 0.10.0
libtpu: 0.0.40
codegen_flags: <defaults>
</compile_context>

<pallas_src>
import jax
import jax.numpy as jnp
from jax.experimental import pallas as pl
from jax.experimental.pallas import tpu as pltpu


def _make_kernel(BB: int, L: int, K: int, pad_l: int, C_in: int):
    """Kernel body with the static conv geometry baked in."""
    use_vpu = (K * C_in) <= 32   # MXU contraction would be ~2-3% utilized

    def kernel(x_ref, w_ref, b_ref, o_ref):
        # x_ref: (BB, C_in, L)        f32  input block, native NCL layout
        # w_ref: (K, C_out_p8, C_in)  f32  conv weights, tap-major (resident)
        # b_ref: (C_out_p8, 1)        f32  conv bias column (resident)
        # o_ref: (1, C_out_p8, BB)    f32  pooled outputs, one column per row
        cols = []
        for bb in range(BB):                       # static -> unrolled
            xb = x_ref[bb]                         # (C_in, L), L on lanes
            acc = None
            for k in range(K):                     # static -> unrolled
                s = k - pad_l                      # input offset of this tap
                # xs[:, t] = x[:, t + s], zero where t + s is out of range
                # ('same' padding done in-kernel; no wrapper pad pass).
                if s > 0:
                    xs = jnp.concatenate(
                        [xb[:, s:], jnp.zeros((C_in, s), xb.dtype)], axis=1)
                elif s < 0:
                    xs = jnp.concatenate(
                        [jnp.zeros((C_in, -s), xb.dtype), xb[:, :L + s]],
                        axis=1)
                else:
                    xs = xb
                if use_vpu:
                    # VPU broadcast-MAC: K*C_in outer-product FMAs, exact f32.
                    wk = w_ref[k]                              # (C_out_p8, C_in)
                    for ci in range(C_in):
                        contrib = wk[:, ci:ci + 1] * xs[ci:ci + 1, :]
                        acc = contrib if acc is None else acc + contrib
                else:
                    part = jnp.dot(w_ref[k], xs,
                                   preferred_element_type=jnp.float32)
                    acc = part if acc is None else acc + part  # (C_out_p8, L)
            # Global max pool over the sequence: lane (XLU) reduction.
            cols.append(jnp.max(acc, axis=-1, keepdims=True))  # (C_out_p8, 1)
        pooled = cols[0] if BB == 1 else jnp.concatenate(cols, axis=-1)
        # Bias + ReLU after the pool (equivalent: per-channel bias, monotone
        # ReLU), applied once on the tiny tile; single dense store per step.
        o_ref[0] = jnp.maximum(pooled + b_ref[...], 0.0)

    return kernel


def _pick_batch_block(B: int, C_in: int, L: int, batch_block: int) -> int:
    """Batch rows per grid step: divisor of B, >=2 grid steps, VMEM-bounded."""
    # >= 2 grid steps whenever B > 1 (v7x has 2 TensorCores; also gives the
    # pipeline a next block to prefetch).
    cap = max(1, min(batch_block, B if B < 2 else B // 2))
    # One input row tile, as laid out in VMEM: C_in sublane-padded to 8,
    # L lane-padded to 128, f32.  Keep the double-buffered block <= ~16 MiB.
    row_bytes = ((C_in + 7) // 8) * 8 * ((L + 127) // 128) * 128 * 4
    cap = max(1, min(cap, (8 << 20) // row_bytes))
    bb = min(cap, B)
    while B % bb:                                  # largest divisor of B <= cap
        bb -= 1
    return bb


def sequence_cnn_forward(x_ncl, weight, bias, *, batch_block=8):
    """
    x_ncl:  (B, C_in, L)      float32  (PyTorch NCL layout, consumed as-is)
    weight: (C_out, C_in, K)  float32  (torch Conv1d weight layout)
    bias:   (C_out,)          float32
    returns (B, C_out) float32
    """
    B, C_in, L = x_ncl.shape
    C_out, _, K = weight.shape
    assert L >= K, "sequence length must be >= kernel_size"

    # torch Conv1d padding='same' (stride=1): pad_l = (K-1)//2, pad_r = K//2.
    pad_l = (K - 1) // 2
    C_out_p8 = ((C_out + 7) // 8) * 8              # sublane-pad output channels

    BB = _pick_batch_block(B, C_in, L, batch_block)
    n_blk = B // BB

    # Tiny parameter relayouts only (x itself is untouched in HBM).
    w_p = jnp.pad(jnp.transpose(weight, (2, 0, 1)),          # (K, C_out, C_in)
                  ((0, 0), (0, C_out_p8 - C_out), (0, 0)))
    b_p = jnp.pad(bias, (0, C_out_p8 - C_out)).reshape(C_out_p8, 1)

    kernel = _make_kernel(BB, L, K, pad_l, C_in)

    out = pl.pallas_call(
        kernel,
        out_shape=jax.ShapeDtypeStruct((n_blk, C_out_p8, BB), jnp.float32),
        grid=(n_blk,),
        in_specs=[
            pl.BlockSpec((BB, C_in, L), lambda i: (i, 0, 0)),
            pl.BlockSpec((K, C_out_p8, C_in), lambda i: (0, 0, 0)),  # resident
            pl.BlockSpec((C_out_p8, 1), lambda i: (0, 0)),           # resident
        ],
        out_specs=pl.BlockSpec((1, C_out_p8, BB), lambda i: (i, 0, 0)),
        compiler_params=pltpu.CompilerParams(
            dimension_semantics=("parallel",),
            # BB is sized so the double-buffered input block stays <= 16 MiB;
            # 32 MiB scoped VMEM is safe on v5e/v6e (128 MiB phys) and v7x
            # (64 MiB phys), and explicitly raises v5e's 16 MiB default.
            vmem_limit_bytes=32 * 1024 * 1024,
        ),
    )(x_ncl, w_p, b_p)

    # Tiny (n_blk, C_out_p8, BB) -> (B, C_out) transpose outside the kernel.
    out = jnp.transpose(out, (0, 2, 1)).reshape(B, C_out_p8)
    return out[:, :C_out]


def reference_forward(x_ncl, weight, bias):
    """Pure-JAX f32 reference of the PyTorch forward (HIGHEST precision)."""
    K = weight.shape[-1]
    pad_l, pad_r = (K - 1) // 2, K // 2
    x_pad = jnp.pad(x_ncl, ((0, 0), (0, 0), (pad_l, pad_r)))
    y = jax.lax.conv_general_dilated(
        x_pad, weight, window_strides=(1,), padding="VALID",
        dimension_numbers=("NCH", "OIH", "NCH"),
        precision=jax.lax.Precision.HIGHEST)
    y = jnp.maximum(y + bias[None, :, None], 0.0)
    return jnp.max(y, axis=-1)


if __name__ == "__main__":
    key = jax.random.PRNGKey(0)
    k1, k2, k3, k4, k5, k6 = jax.random.split(key, 6)

    # Case 1: spec-sized shapes (odd K); B=2 -> BB=1 so the grid still has 2
    # parallel steps.
    B, C_in, L, C_out, K = 2, 4, 16, 8, 3
    x = jax.random.normal(k1, (B, C_in, L), dtype=jnp.float32)
    w = jax.random.normal(k2, (C_out, C_in, K), dtype=jnp.float32) * 0.1
    b = jax.random.normal(k3, (C_out,), dtype=jnp.float32) * 0.1
    out = jax.block_until_ready(jax.jit(sequence_cnn_forward)(x, w, b))
    ref = reference_forward(x, w, b)
    assert out.shape == (B, C_out)
    assert jnp.allclose(out, ref, atol=1e-4, rtol=1e-4), (out, ref)

    # Case 2: even K (asymmetric 'same' padding), odd C_in, non-multiple-of-8
    # C_out, batch with no power-of-two block -> exercises the BB divisor
    # logic and the zero-padded output channels.
    B, C_in, L, C_out, K = 5, 3, 20, 6, 4
    x = jax.random.normal(k4, (B, C_in, L), dtype=jnp.float32)
    w = jax.random.normal(k5, (C_out, C_in, K), dtype=jnp.float32) * 0.1
    b = jax.random.normal(k6, (C_out,), dtype=jnp.float32) * 0.1
    out2 = jax.block_until_ready(jax.jit(sequence_cnn_forward)(x, w, b))
    ref2 = reference_forward(x, w, b)
    assert out2.shape == (B, C_out)
    assert jnp.allclose(out2, ref2, atol=1e-4, rtol=1e-4), (out2, ref2)

    print("KERNEL_OK")
</pallas_src>

<mosaic_0001>
module attributes {stable_mosaic.version = 11 : i64} {
  func.func @kernel(%arg0: i32, %arg1: memref<1x4x16xf32, #tpu.memory_space<vmem>>, %arg2: memref<3x8x4xf32, #tpu.memory_space<vmem>>, %arg3: memref<8x1xf32, #tpu.memory_space<vmem>>, %arg4: memref<1x8x1xf32, #tpu.memory_space<vmem>>) attributes {dimension_semantics = [#tpu.dimension_semantics<parallel>], iteration_bounds = array<i64: 2>, scalar_prefetch = 0 : i64, scratch_operands = 0 : i64, tpu.core_type = #tpu.core_type<tc>, window_params = [{transform_indices = @transform_0, window_bounds = array<i64: 1, 4, 16>}, {pipeline_mode = #tpu.pipeline_mode<synchronous>, transform_indices = @transform_1, window_bounds = array<i64: 3, 8, 4>}, {pipeline_mode = #tpu.pipeline_mode<synchronous>, transform_indices = @transform_2, window_bounds = array<i64: 8, 1>}, {transform_indices = @transform_3, window_bounds = array<i64: 1, 8, 1>}]} {
    %c0 = arith.constant 0 : index
    %c0_0 = arith.constant 0 : index
    %c0_1 = arith.constant 0 : index
    %0 = vector.load %arg1[%c0, %c0_0, %c0_1] : memref<1x4x16xf32, #tpu.memory_space<vmem>>, vector<1x4x16xf32>
    %1 = vector.shape_cast %0 : vector<1x4x16xf32> to vector<4x16xf32>
    %cst = arith.constant 0.000000e+00 : f32
    %2 = vector.broadcast %cst : f32 to vector<4x1xf32>
    %3 = vector.extract_strided_slice %1 {offsets = [0, 0], sizes = [4, 15], strides = [1, 1]} : vector<4x16xf32> to vector<4x15xf32>
    %4 = tpu.concatenate %2, %3 in 1 : vector<4x1xf32>, vector<4x15xf32> -> vector<4x16xf32>
    %c0_2 = arith.constant 0 : index
    %c0_3 = arith.constant 0 : index
    %c0_4 = arith.constant 0 : index
    %5 = vector.load %arg2[%c0_2, %c0_3, %c0_4] : memref<3x8x4xf32, #tpu.memory_space<vmem>>, vector<1x8x4xf32>
    %6 = vector.shape_cast %5 : vector<1x8x4xf32> to vector<8x4xf32>
    %7 = vector.extract_strided_slice %6 {offsets = [0, 0], sizes = [8, 1], strides = [1, 1]} : vector<8x4xf32> to vector<8x1xf32>
    %8 = vector.extract_strided_slice %4 {offsets = [0, 0], sizes = [1, 16], strides = [1, 1]} : vector<4x16xf32> to vector<1x16xf32>
    %9 = vector.broadcast %7 : vector<8x1xf32> to vector<8x16xf32>
    %10 = vector.broadcast %8 : vector<1x16xf32> to vector<8x16xf32>
    %11 = arith.mulf %9, %10 : vector<8x16xf32>
    %12 = vector.extract_strided_slice %6 {offsets = [0, 1], sizes = [8, 1], strides = [1, 1]} : vector<8x4xf32> to vector<8x1xf32>
    %13 = vector.extract_strided_slice %4 {offsets = [1, 0], sizes = [1, 16], strides = [1, 1]} : vector<4x16xf32> to vector<1x16xf32>
    %14 = vector.broadcast %12 : vector<8x1xf32> to vector<8x16xf32>
    %15 = vector.broadcast %13 : vector<1x16xf32> to vector<8x16xf32>
    %16 = arith.mulf %14, %15 : vector<8x16xf32>
    %17 = arith.addf %11, %16 : vector<8x16xf32>
    %18 = vector.extract_strided_slice %6 {offsets = [0, 2], sizes = [8, 1], strides = [1, 1]} : vector<8x4xf32> to vector<8x1xf32>
    %19 = vector.extract_strided_slice %4 {offsets = [2, 0], sizes = [1, 16], strides = [1, 1]} : vector<4x16xf32> to vector<1x16xf32>
    %20 = vector.broadcast %18 : vector<8x1xf32> to vector<8x16xf32>
    %21 = vector.broadcast %19 : vector<1x16xf32> to vector<8x16xf32>
    %22 = arith.mulf %20, %21 : vector<8x16xf32>
    %23 = arith.addf %17, %22 : vector<8x16xf32>
    %24 = vector.extract_strided_slice %6 {offsets = [0, 3], sizes = [8, 1], strides = [1, 1]} : vector<8x4xf32> to vector<8x1xf32>
    %25 = vector.extract_strided_slice %4 {offsets = [3, 0], sizes = [1, 16], strides = [1, 1]} : vector<4x16xf32> to vector<1x16xf32>
    %26 = vector.broadcast %24 : vector<8x1xf32> to vector<8x16xf32>
    %27 = vector.broadcast %25 : vector<1x16xf32> to vector<8x16xf32>
    %28 = arith.mulf %26, %27 : vector<8x16xf32>
    %29 = arith.addf %23, %28 : vector<8x16xf32>
    %c1 = arith.constant 1 : index
    %c0_5 = arith.constant 0 : index
    %c0_6 = arith.constant 0 : index
    %30 = vector.load %arg2[%c1, %c0_5, %c0_6] : memref<3x8x4xf32, #tpu.memory_space<vmem>>, vector<1x8x4xf32>
    %31 = vector.shape_cast %30 : vector<1x8x4xf32> to vector<8x4xf32>
    %32 = vector.extract_strided_slice %31 {offsets = [0, 0], sizes = [8, 1], strides = [1, 1]} : vector<8x4xf32> to vector<8x1xf32>
    %33 = vector.extract_strided_slice %1 {offsets = [0, 0], sizes = [1, 16], strides = [1, 1]} : vector<4x16xf32> to vector<1x16xf32>
    %34 = vector.broadcast %32 : vector<8x1xf32> to vector<8x16xf32>
    %35 = vector.broadcast %33 : vector<1x16xf32> to vector<8x16xf32>
    %36 = arith.mulf %34, %35 : vector<8x16xf32>
    %37 = arith.addf %29, %36 : vector<8x16xf32>
    %38 = vector.extract_strided_slice %31 {offsets = [0, 1], sizes = [8, 1], strides = [1, 1]} : vector<8x4xf32> to vector<8x1xf32>
    %39 = vector.extract_strided_slice %1 {offsets = [1, 0], sizes = [1, 16], strides = [1, 1]} : vector<4x16xf32> to vector<1x16xf32>
    %40 = vector.broadcast %38 : vector<8x1xf32> to vector<8x16xf32>
    %41 = vector.broadcast %39 : vector<1x16xf32> to vector<8x16xf32>
    %42 = arith.mulf %40, %41 : vector<8x16xf32>
    %43 = arith.addf %37, %42 : vector<8x16xf32>
    %44 = vector.extract_strided_slice %31 {offsets = [0, 2], sizes = [8, 1], strides = [1, 1]} : vector<8x4xf32> to vector<8x1xf32>
    %45 = vector.extract_strided_slice %1 {offsets = [2, 0], sizes = [1, 16], strides = [1, 1]} : vector<4x16xf32> to vector<1x16xf32>
    %46 = vector.broadcast %44 : vector<8x1xf32> to vector<8x16xf32>
    %47 = vector.broadcast %45 : vector<1x16xf32> to vector<8x16xf32>
    %48 = arith.mulf %46, %47 : vector<8x16xf32>
    %49 = arith.addf %43, %48 : vector<8x16xf32>
    %50 = vector.extract_strided_slice %31 {offsets = [0, 3], sizes = [8, 1], strides = [1, 1]} : vector<8x4xf32> to vector<8x1xf32>
    %51 = vector.extract_strided_slice %1 {offsets = [3, 0], sizes = [1, 16], strides = [1, 1]} : vector<4x16xf32> to vector<1x16xf32>
    %52 = vector.broadcast %50 : vector<8x1xf32> to vector<8x16xf32>
    %53 = vector.broadcast %51 : vector<1x16xf32> to vector<8x16xf32>
    %54 = arith.mulf %52, %53 : vector<8x16xf32>
    %55 = arith.addf %49, %54 : vector<8x16xf32>
    %56 = vector.extract_strided_slice %1 {offsets = [0, 1], sizes = [4, 15], strides = [1, 1]} : vector<4x16xf32> to vector<4x15xf32>
    %cst_7 = arith.constant 0.000000e+00 : f32
    %57 = vector.broadcast %cst_7 : f32 to vector<4x1xf32>
    %58 = tpu.concatenate %56, %57 in 1 : vector<4x15xf32>, vector<4x1xf32> -> vector<4x16xf32>
    %c2 = arith.constant 2 : index
    %c0_8 = arith.constant 0 : index
    %c0_9 = arith.constant 0 : index
    %59 = vector.load %arg2[%c2, %c0_8, %c0_9] : memref<3x8x4xf32, #tpu.memory_space<vmem>>, vector<1x8x4xf32>
    %60 = vector.shape_cast %59 : vector<1x8x4xf32> to vector<8x4xf32>
    %61 = vector.extract_strided_slice %60 {offsets = [0, 0], sizes = [8, 1], strides = [1, 1]} : vector<8x4xf32> to vector<8x1xf32>
    %62 = vector.extract_strided_slice %58 {offsets = [0, 0], sizes = [1, 16], strides = [1, 1]} : vector<4x16xf32> to vector<1x16xf32>
    %63 = vector.broadcast %61 : vector<8x1xf32> to vector<8x16xf32>
    %64 = vector.broadcast %62 : vector<1x16xf32> to vector<8x16xf32>
    %65 = arith.mulf %63, %64 : vector<8x16xf32>
    %66 = arith.addf %55, %65 : vector<8x16xf32>
    %67 = vector.extract_strided_slice %60 {offsets = [0, 1], sizes = [8, 1], strides = [1, 1]} : vector<8x4xf32> to vector<8x1xf32>
    %68 = vector.extract_strided_slice %58 {offsets = [1, 0], sizes = [1, 16], strides = [1, 1]} : vector<4x16xf32> to vector<1x16xf32>
    %69 = vector.broadcast %67 : vector<8x1xf32> to vector<8x16xf32>
    %70 = vector.broadcast %68 : vector<1x16xf32> to vector<8x16xf32>
    %71 = arith.mulf %69, %70 : vector<8x16xf32>
    %72 = arith.addf %66, %71 : vector<8x16xf32>
    %73 = vector.extract_strided_slice %60 {offsets = [0, 2], sizes = [8, 1], strides = [1, 1]} : vector<8x4xf32> to vector<8x1xf32>
    %74 = vector.extract_strided_slice %58 {offsets = [2, 0], sizes = [1, 16], strides = [1, 1]} : vector<4x16xf32> to vector<1x16xf32>
    %75 = vector.broadcast %73 : vector<8x1xf32> to vector<8x16xf32>
    %76 = vector.broadcast %74 : vector<1x16xf32> to vector<8x16xf32>
    %77 = arith.mulf %75, %76 : vector<8x16xf32>
    %78 = arith.addf %72, %77 : vector<8x16xf32>
    %79 = vector.extract_strided_slice %60 {offsets = [0, 3], sizes = [8, 1], strides = [1, 1]} : vector<8x4xf32> to vector<8x1xf32>
    %80 = vector.extract_strided_slice %58 {offsets = [3, 0], sizes = [1, 16], strides = [1, 1]} : vector<4x16xf32> to vector<1x16xf32>
    %81 = vector.broadcast %79 : vector<8x1xf32> to vector<8x16xf32>
    %82 = vector.broadcast %80 : vector<1x16xf32> to vector<8x16xf32>
    %83 = arith.mulf %81, %82 : vector<8x16xf32>
    %84 = arith.addf %78, %83 : vector<8x16xf32>
    %cst_10 = arith.constant dense<0xFF800000> : vector<8xf32>
    %85 = vector.multi_reduction <maximumf>, %84, %cst_10 [1] : vector<8x16xf32> to vector<8xf32>
    %86 = vector.shape_cast %85 : vector<8xf32> to vector<8x1xf32>
    %c0_11 = arith.constant 0 : index
    %c0_12 = arith.constant 0 : index
    %87 = vector.load %arg3[%c0_11, %c0_12] : memref<8x1xf32, #tpu.memory_space<vmem>>, vector<8x1xf32>
    %88 = arith.addf %86, %87 : vector<8x1xf32>
    %cst_13 = arith.constant 0.000000e+00 : f32
    %89 = vector.broadcast %cst_13 : f32 to vector<8x1xf32>
    %90 = arith.maximumf %88, %89 : vector<8x1xf32>
    %c0_14 = arith.constant 0 : index
    %c0_15 = arith.constant 0 : index
    %c0_16 = arith.constant 0 : index
    %91 = vector.load %arg4[%c0_14, %c0_15, %c0_16] : memref<1x8x1xf32, #tpu.memory_space<vmem>>, vector<1x8x1xf32>
    %92 = vector.shape_cast %91 : vector<1x8x1xf32> to vector<8x1xf32>
    %93 = vector.shape_cast %90 : vector<8x1xf32> to vector<1x8x1xf32>
    tpu.vector_store %arg4[%c0_14, %c0_15, %c0_16], %93 {strides = array<i32>} : memref<1x8x1xf32, #tpu.memory_space<vmem>>, vector<1x8x1xf32>,
    return
  }
  func.func @transform_0(%arg0: i32) -> (i32, i32, i32) {
    %c0_i32 = arith.constant 0 : i32
    %c0_i32_0 = arith.constant 0 : i32
    %c0_i32_1 = arith.constant 0 : i32
    return %arg0, %c0_i32, %c0_i32_0 : i32, i32, i32
  }
  func.func @transform_1(%arg0: i32) -> (i32, i32, i32) {
    %c0_i32 = arith.constant 0 : i32
    %c0_i32_0 = arith.constant 0 : i32
    %c0_i32_1 = arith.constant 0 : i32
    %c0_i32_2 = arith.constant 0 : i32
    return %c0_i32, %c0_i32_0, %c0_i32_1 : i32, i32, i32
  }
  func.func @transform_2(%arg0: i32) -> (i32, i32) {
    %c0_i32 = arith.constant 0 : i32
    %c0_i32_0 = arith.constant 0 : i32
    %c0_i32_1 = arith.constant 0 : i32
    return %c0_i32, %c0_i32_0 : i32, i32
  }
  func.func @transform_3(%arg0: i32) -> (i32, i32, i32) {
    %c0_i32 = arith.constant 0 : i32
    %c0_i32_0 = arith.constant 0 : i32
    %c0_i32_1 = arith.constant 0 : i32
    return %arg0, %c0_i32, %c0_i32_0 : i32, i32, i32
  }
}

</mosaic_0001>

<bundles_post_ra>
// kernel: sequence_cnn_forward.1
= control target key start
LH: loop header
LB: loop body
LE: loop exit
PB: predicated region body
PF: predicated region fallthrough
CT: control target
= control target key end

     0   :  { %s402_s12 = smov 0   ;;  %s445_s0 = inlined_call_operand.vmem [shape: f32[2,4,16], index: 0, kind: input, shape index: {}]   ;;  %s446_s1 = inlined_call_operand.vmem [shape: f32[3,8,4], index: 1, kind: input, shape index: {}]   ;;  %s447_s2 = inlined_call_operand.vmem [shape: f32[8,1], index: 2, kind: input, shape index: {}]   ;;  %s448_s3 = inlined_call_operand.vmem [shape: f32[2,8,1], index: 3, kind: output, shape index: {}]  }
   0x1 LB: > { %s330_s13 = sadd.s32 4294967295, %s374_s12   ;;  %p334_p0 = scmp.ge.s32.totalorder %s374_s12, 1  ;;  %s374_s12 = sphi %s402_s12, %s13_s12  }
   0x2   : > { %p136_p1 = scmp.lt.s32.totalorder %s374_s12, 3 }
   0x4   : > { %p137_p2 = pnand %p334_p0, %p136_p1 }
   0x5   : > { %p158_p3 = scmp.lt.s32.totalorder (!%p137_p2), %s330_s13, 1  ;;  %s379_s20 = smov (!%p137_p2), 1  }
   0x6   : > { %140 = sbr.rel (%p137_p2) target bundleno = 292 (0x124), region = 32  ;;  %s381_s23 = smov (!%p137_p2), 127  }
   0xb   : > { %v173_v0 = vld [vmem:[%s446_s1] sm:$0xff]  ;;  %v376_v1 = vmov 1   ;;  %v377_v2 = vmov 0   ;;  %s450_s13 = smov (!%p158_p3, %s330_s13), 1  ;;  %v378_v3 = vmov 3   ;;  %v380_v5 = vmov 2  }
   0xc   : > { %356 = vset.pattern.permute.xlu1 %v376_v1  ;;  %355 = vset.pattern.permute.xlu0 %v377_v2  ;;  %s335_s16 = sshll.u32 %s450_s13, 2  ;;  %v337_v6 = vld [vmem:[%s446_s1 + $0x8] sm:$0xff]  ;;  %v338_v7 = vld [vmem:[%s446_s1 + $0x10] sm:$0xff]  ;;  %vm171_vm0 = vcmask 7168   ;;  %vm236_vm1 = vcmask 121856   ;;  %vm269_vm2 = vcmask 130048  }
   0xd   : > { %182 = vperm.xlu1 %356, %v173_v0   ;;  %358 = vset.pattern.permute.xlu2 %v378_v3  ;;  %s161_s19 = scalar_lea.vmem %s445_s0, %s335_s16  ;;  %v273_v60 = vld [vmem:[%s447_s2] sm:$0xff]  ;;  %s336_s28 = sshll.u32 %s450_s13, 3 }
   0xe   : > { %196 = vperm.xlu2 %358, %v173_v0   ;;  %v419_v4 = vld [vmem:[%s161_s19] sm:$0xf]  ;;  %s165_s4 = scalar_lea.vmem %s448_s3, %s336_s28 }
   0xf   : > { %168 = vrot.lane.b32.xlu0 %v419_v4, %s379_s20  ;;  %v209_v21 = vperm.slane %v419_v4, 0  ;;  %v216_v28 = vperm.slane %v419_v4, 1  ;;  %v223_v32 = vperm.slane %v419_v4, 2  ;;  %v230_v37 = vperm.slane %v419_v4, 3 }
  0x15   : > { %357 = vset.pattern.permute.xlu1 %v380_v5 }
  0x16   : > { %189 = vperm.xlu1 %357, %v173_v0   ;;  %359 = vset.pattern.permute.xlu2 %v377_v2 }
  0x17   : > { %206 = vperm.xlu2 %359, %v337_v6   ;;  %176 = vperm.xlu0 %355, %v173_v0  }
  0x1e   : > { %360 = vset.pattern.permute.xlu1 %v376_v1 }
  0x1f   : > { %213 = vperm.xlu1 %360, %v337_v6   ;;  %361 = vset.pattern.permute.xlu2 %v380_v5 }
  0x20   : > { %220 = vperm.xlu2 %361, %v337_v6   ;;  %233 = vrot.lane.b32.xlu0 %v419_v4, %s381_s23 }
  0x21   : > { %364 = vset.pattern.permute.xlu0 %v376_v1 }
  0x27   : > { %362 = vset.pattern.permute.xlu1 %v378_v3 }
  0x28   : > { %227 = vperm.xlu1 %362, %v337_v6   ;;  %363 = vset.pattern.permute.xlu2 %v377_v2 }
  0x29   : > { %242 = vperm.xlu2 %363, %v338_v7   ;;  %249 = vperm.xlu0 %364, %v338_v7  }
  0x30   : > { %365 = vset.pattern.permute.xlu1 %v380_v5 }
  0x31   : > { %256 = vperm.xlu1 %365, %v338_v7   ;;  %366 = vset.pattern.permute.xlu2 %v378_v3 }
  0x32   : > { %263 = vperm.xlu2 %366, %v338_v7   ;;  %367 = vset.pattern.permute.xlu0 %v378_v3 }
  0x68   : > { %v197_v8 = vpop.permute.xlu2 %196 }
  0x71   : > { %v207_v11 = vpop.permute.xlu2 %206 }
  0x72   : > { %v210_v29 = vmul.f32 %v209_v21, %v207_v11 }
  0x7a   : > { %v221_v23 = vpop.permute.xlu2 %220 }
  0x7b   : > { %v224_v39 = vmul.f32 %v223_v32, %v221_v23 }
  0x7f   : > { %v183_v9 = vpop.permute.xlu1 %182 }
  0x81   : > { %v169_v10 = vpop.permute.xlu0 %168 }
  0x82   : > { %v172_v12 = vsel %vm171_vm0, 0.0, %v169_v10 }
  0x83   : > { %v185_v14 = vperm.slane %v172_v12, 1  ;;  %v179_v15 = vperm.slane %v172_v12, 0  ;;  %v192_v16 = vperm.slane %v172_v12, 2  ;;  %v199_v18 = vperm.slane %v172_v12, 3  ;;  %v243_v40 = vpop.permute.xlu2 %242 }
  0x85   : > { %v186_v19 = vmul.f32 %v185_v14, %v183_v9  ;;  %v200_v25 = vmul.f32 %v199_v18, %v197_v8 }
  0x88   : > { %v190_v13 = vpop.permute.xlu1 %189 }
  0x89   : > { %v177_v17 = vpop.permute.xlu0 %176  ;;  %v193_v22 = vmul.f32 %v192_v16, %v190_v13 }
  0x8a   : > { %v180_v20 = vmul.f32 %v179_v15, %v177_v17 }
  0x8c   : > { %v187_v24 = vadd.f32 %v186_v19, %v180_v20  ;;  %v264_v52 = vpop.permute.xlu2 %263 }
  0x8e   : > { %v194_v26 = vadd.f32 %v193_v22, %v187_v24 }
  0x90   : > { %v201_v30 = vadd.f32 %v200_v25, %v194_v26 }
  0x91   : > { %v214_v27 = vpop.permute.xlu1 %213 }
  0x92   : > { %v234_v31 = vpop.permute.xlu0 %233  ;;  %v211_v33 = vadd.f32 %v210_v29, %v201_v30  ;;  %v217_v34 = vmul.f32 %v216_v28, %v214_v27 }
  0x93   : > { %v237_v35 = vsel %vm236_vm1, %v234_v31, 0.0 }
  0x94   : > { %v218_v36 = vadd.f32 %v217_v34, %v211_v33  ;;  %v245_v38 = vperm.slane %v237_v35, 0  ;;  %v252_v46 = vperm.slane %v237_v35, 1  ;;  %v266_v49 = vperm.slane %v237_v35, 3 }
  0x95   : > { %v259_v51 = vperm.slane %v237_v35, 2 }
  0x96   : > { %v225_v42 = vadd.f32 %v224_v39, %v218_v36  ;;  %v246_v44 = vmul.f32 %v245_v38, %v243_v40  ;;  %v267_v56 = vmul.f32 %v266_v49, %v264_v52 }
  0x9a   : > { %v228_v41 = vpop.permute.xlu1 %227 }
  0x9b   : > { %v231_v43 = vmul.f32 %v230_v37, %v228_v41  ;;  %v250_v47 = vpop.permute.xlu0 %249 }
  0x9c   : > { %v253_v50 = vmul.f32 %v252_v46, %v250_v47 }
  0x9d   : > { %v232_v45 = vadd.f32 %v231_v43, %v225_v42 }
  0x9f   : > { %v247_v48 = vadd.f32 %v246_v44, %v232_v45 }
  0xa1   : > { %v254_v54 = vadd.f32 %v253_v50, %v247_v48 }
  0xa3   : > { %v257_v53 = vpop.permute.xlu1 %256 }
  0xa4   : > { %v260_v55 = vmul.f32 %v259_v51, %v257_v53 }
  0xa6   : > { %v261_v57 = vadd.f32 %v260_v55, %v254_v54 }
  0xa8   : > { %v268_v58 = vadd.f32 %v267_v56, %v261_v57 }
  0xaa   : > { %v270_v59 = vsel %vm269_vm2, %v268_v58, -inf }
  0xab   : > { %271 = vmax.xlane.f32.xlu1 %v270_v59 }
 0x11e   : > { %v272_v61 = vpop.xlane.xlu1 %271 }
 0x11f   : > { %v274_v62 = vadd.f32 %v273_v60, %v272_v61 }
 0x121   : > { %v275_v63 = vmax.f32 %v274_v62, 0.0 }
 0x123   : > { %276 = vst.msk [vmem:[%s165_s4] sm:$0xff] %vm171_vm0, %v275_v63 }
 0x124 PF: > { %s13_s12 = sadd.s32 1, %s374_s12  }
 0x125   : > { %p10_p4 = scmp.ge.s32.totalorder %s13_s12, 4  }
 0x127   :  { %12 = sbr.rel (!%p10_p4) target bundleno = 1 (0x1), region = 64 }

</bundles_post_ra>
